<compile_context>
chip_gen: v7x
topology: tpu7x:2x2x1
jax: 0.10.0
libtpu: 0.0.40
codegen_flags: <defaults>
</compile_context>

<pallas_src>
import functools

import jax
import jax.numpy as jnp
from jax.experimental import pallas as pl
from jax.experimental.pallas import tpu as pltpu


def _round_up(x, m):
    return (x + m - 1) // m * m


def _choose_batch_tile(batch):
    """Pick the batch tile (multiple of 8) and the padded batch extent."""
    b8 = _round_up(max(batch, 1), 8)
    if b8 <= 8:
        return 8, 8
    # >= 2 grid steps (feeds both v7x TensorCores, keeps x/o DMA double-buffering active);
    # <= 512 rows per tile (v5e/v6e HBM-roofline sweet spot, tiny VMEM footprint).
    tb = min(512, _round_up((b8 + 1) // 2, 8))
    return tb, _round_up(b8, tb)


# --------------------------------------------------------------------------------- kernel body
def predict_with_base_kernel(dgl_ref, base_ref, w_dgl_ref, w_base_ref, b_ref, o_ref):
    # dgl_ref:   (TB, D1)          base_ref:   (TB, D2)
    # w_dgl_ref: (D1, OUT_P)       w_base_ref: (D2, OUT_P)   (pre-transposed (K, N) layout)
    # b_ref:     (1, OUT_P)        o_ref:      (TB, OUT_P)
    logits = jnp.dot(dgl_ref[...], w_dgl_ref[...], preferred_element_type=jnp.float32)
    logits = logits + jnp.dot(base_ref[...], w_base_ref[...],
                              preferred_element_type=jnp.float32)
    logits = logits + b_ref[...]        # padded columns carry bias = -1e30 -> exp() == 0

    # Numerically stable softmax over the last (lane) dim; exact divide (one scalar per row).
    m = jnp.max(logits, axis=-1, keepdims=True)
    e = jnp.exp(logits - m)
    denom = jnp.sum(e, axis=-1, keepdims=True)
    o_ref[...] = (e / denom).astype(o_ref.dtype)


# --------------------------------------------------------------------------- one-time param prep
def prepare_params(weight, bias, dgl_dim):
    """One-time parameter prep -- call once at model setup, NOT per forward.

    Splits the PyTorch (out, in) weight at dgl_dim (fuses torch.cat into the kernel),
    transposes each half to (in, out) so the MXU sees canonical (K, N) operands, and pads the
    out dim to a multiple of 128 for lane-dense stores / full MXU N fill. Padded bias columns
    are -1e30 so the padded logits vanish under softmax.
    """
    out_size, in_size = weight.shape
    assert 0 < dgl_dim < in_size
    out_p = _round_up(out_size, 128)
    pad_out = out_p - out_size
    w_dgl_t = jnp.pad(jnp.transpose(weight[:, :dgl_dim]), ((0, 0), (0, pad_out)))
    w_base_t = jnp.pad(jnp.transpose(weight[:, dgl_dim:]), ((0, 0), (0, pad_out)))
    bias_p = jnp.pad(bias, (0, pad_out), constant_values=-1e30).reshape(1, out_p)
    return w_dgl_t, w_base_t, bias_p, out_size


# --------------------------------------------------------------------------------- forward call
@functools.partial(jax.jit, static_argnames=("out_size",))
def predict_with_base(dgl_feat, base_feat, w_dgl_t, w_base_t, bias_p, *, out_size):
    """Forward of Predictwithbase using pre-built params from prepare_params().

    dgl_feat:  (B, D1) float32      base_feat: (B, D2) float32
    returns:   (B, out_size) float32, rows sum to 1
    """
    B, d1 = dgl_feat.shape
    _, d2 = base_feat.shape
    out_p = bias_p.shape[1]

    tb, b_p = _choose_batch_tile(B)
    if b_p != B:  # only pad activations when the batch tile does not divide B
        dgl_feat = jnp.pad(dgl_feat, ((0, b_p - B), (0, 0)))
        base_feat = jnp.pad(base_feat, ((0, b_p - B), (0, 0)))
    grid = (b_p // tb,)

    # VMEM budget: double-buffered activation/output tiles, resident weights/bias (2 copies),
    # plus the f32 softmax intermediates (logits, e, output staging) that live in VMEM too.
    itemsize = 4
    need = (2 * tb * (d1 + d2 + out_p)
            + 2 * (out_p * (d1 + d2) + out_p)
            + 3 * tb * out_p) * itemsize
    vmem_limit = int(min(max(need + (4 << 20), 8 << 20), 48 << 20))

    out_padded = pl.pallas_call(
        predict_with_base_kernel,
        out_shape=jax.ShapeDtypeStruct((b_p, out_p), jnp.float32),
        grid_spec=pltpu.PrefetchScalarGridSpec(
            num_scalar_prefetch=0,
            grid=grid,
            in_specs=[
                pl.BlockSpec((tb, d1), lambda i: (i, 0)),      # dgl_feat tile
                pl.BlockSpec((tb, d2), lambda i: (i, 0)),      # base_feat tile
                pl.BlockSpec((d1, out_p), lambda i: (0, 0)),   # weight half (resident in VMEM)
                pl.BlockSpec((d2, out_p), lambda i: (0, 0)),   # weight half (resident in VMEM)
                pl.BlockSpec((1, out_p), lambda i: (0, 0)),    # bias       (resident in VMEM)
            ],
            out_specs=pl.BlockSpec((tb, out_p), lambda i: (i, 0)),
        ),
        compiler_params=pltpu.CompilerParams(
            dimension_semantics=("parallel",),   # batch tiles independent -> megacore / v7x TCs
            vmem_limit_bytes=vmem_limit,
        ),
    )(dgl_feat, base_feat, w_dgl_t, w_base_t, bias_p)

    return out_padded[:B, :out_size]


if __name__ == "__main__":
    # Small shapes consistent with the module: two feature tensors cat'ed on the last dim.
    batch, dgl_dim, base_dim, out_size = 8, 32, 32, 16
    in_size = dgl_dim + base_dim

    key = jax.random.PRNGKey(0)
    k1, k2, kw, kb = jax.random.split(key, 4)

    dgl_feat = jax.random.normal(k1, (batch, dgl_dim), dtype=jnp.float32)
    base_feat = jax.random.normal(k2, (batch, base_dim), dtype=jnp.float32)
    bound = 1.0 / (in_size ** 0.5)
    weight = jax.random.uniform(kw, (out_size, in_size), dtype=jnp.float32,
                                minval=-bound, maxval=bound)
    bias = jax.random.uniform(kb, (out_size,), dtype=jnp.float32,
                              minval=-bound, maxval=bound)

    # One-time parameter prep (outside the hot path).
    w_dgl_t, w_base_t, bias_p, out_dim = prepare_params(weight, bias, dgl_dim)
    w_dgl_t, w_base_t, bias_p = jax.block_until_ready((w_dgl_t, w_base_t, bias_p))

    out = predict_with_base(dgl_feat, base_feat, w_dgl_t, w_base_t, bias_p, out_size=out_dim)
    out = jax.block_until_ready(out)

    # Reference in plain JAX (matches the PyTorch forward).
    final_feat = jnp.concatenate([dgl_feat, base_feat], axis=-1)
    ref = jax.nn.softmax(final_feat @ weight.T + bias, axis=-1)

    assert out.shape == (batch, out_size)
    assert jnp.allclose(out, ref, atol=1e-3, rtol=1e-3)
    # Exact softmax divide -> rows sum to 1 to float32 accuracy.
    assert jnp.allclose(jnp.sum(out, axis=-1), 1.0, atol=1e-3)

    print("KERNEL_OK")
</pallas_src>

<mosaic_0001>
module attributes {stable_mosaic.version = 11 : i64} {
  func.func @predict_with_base_kernel(%arg0: i32, %arg1: memref<8x32xf32, #tpu.memory_space<vmem>>, %arg2: memref<8x32xf32, #tpu.memory_space<vmem>>, %arg3: memref<32x128xf32, #tpu.memory_space<vmem>>, %arg4: memref<32x128xf32, #tpu.memory_space<vmem>>, %arg5: memref<1x128xf32, #tpu.memory_space<vmem>>, %arg6: memref<8x128xf32, #tpu.memory_space<vmem>>) attributes {dimension_semantics = [#tpu.dimension_semantics<parallel>], iteration_bounds = array<i64: 1>, scalar_prefetch = 0 : i64, scratch_operands = 0 : i64, tpu.core_type = #tpu.core_type<tc>, window_params = [{transform_indices = @transform_0, window_bounds = array<i64: 8, 32>}, {transform_indices = @transform_1, window_bounds = array<i64: 8, 32>}, {pipeline_mode = #tpu.pipeline_mode<synchronous>, transform_indices = @transform_2, window_bounds = array<i64: 32, 128>}, {pipeline_mode = #tpu.pipeline_mode<synchronous>, transform_indices = @transform_3, window_bounds = array<i64: 32, 128>}, {pipeline_mode = #tpu.pipeline_mode<synchronous>, transform_indices = @transform_4, window_bounds = array<i64: 1, 128>}, {transform_indices = @transform_5, window_bounds = array<i64: 8, 128>}]} {
    %c0 = arith.constant 0 : index
    %c0_0 = arith.constant 0 : index
    %0 = vector.load %arg1[%c0, %c0_0] : memref<8x32xf32, #tpu.memory_space<vmem>>, vector<8x32xf32>
    %c0_1 = arith.constant 0 : index
    %c0_2 = arith.constant 0 : index
    %1 = vector.load %arg3[%c0_1, %c0_2] : memref<32x128xf32, #tpu.memory_space<vmem>>, vector<32x128xf32>
    %cst = arith.constant dense<0.000000e+00> : vector<8x128xf32>
    %2 = tpu.matmul %0, %1, %cst {dimension_numbers = #tpu.dot_dimension_numbers<[1], [0], [0], [1], [0, 0, 1, 1], [], []>} : vector<8x32xf32>, vector<32x128xf32>, vector<8x128xf32> -> vector<8x128xf32>
    %c0_3 = arith.constant 0 : index
    %c0_4 = arith.constant 0 : index
    %3 = vector.load %arg2[%c0_3, %c0_4] : memref<8x32xf32, #tpu.memory_space<vmem>>, vector<8x32xf32>
    %c0_5 = arith.constant 0 : index
    %c0_6 = arith.constant 0 : index
    %4 = vector.load %arg4[%c0_5, %c0_6] : memref<32x128xf32, #tpu.memory_space<vmem>>, vector<32x128xf32>
    %cst_7 = arith.constant dense<0.000000e+00> : vector<8x128xf32>
    %5 = tpu.matmul %3, %4, %cst_7 {dimension_numbers = #tpu.dot_dimension_numbers<[1], [0], [0], [1], [0, 0, 1, 1], [], []>} : vector<8x32xf32>, vector<32x128xf32>, vector<8x128xf32> -> vector<8x128xf32>
    %6 = arith.addf %2, %5 : vector<8x128xf32>
    %c0_8 = arith.constant 0 : index
    %c0_9 = arith.constant 0 : index
    %7 = vector.load %arg5[%c0_8, %c0_9] : memref<1x128xf32, #tpu.memory_space<vmem>>, vector<1x128xf32>
    %8 = vector.broadcast %7 : vector<1x128xf32> to vector<8x128xf32>
    %9 = arith.addf %6, %8 : vector<8x128xf32>
    %cst_10 = arith.constant dense<0xFF800000> : vector<8xf32>
    %10 = vector.multi_reduction <maximumf>, %9, %cst_10 [1] : vector<8x128xf32> to vector<8xf32>
    %11 = vector.shape_cast %10 : vector<8xf32> to vector<8x1xf32>
    %12 = vector.broadcast %11 : vector<8x1xf32> to vector<8x128xf32>
    %13 = arith.subf %9, %12 : vector<8x128xf32>
    %14 = math.exp %13 : vector<8x128xf32>
    %cst_11 = arith.constant dense<0.000000e+00> : vector<8xf32>
    %15 = vector.multi_reduction <add>, %14, %cst_11 [1] : vector<8x128xf32> to vector<8xf32>
    %16 = vector.shape_cast %15 : vector<8xf32> to vector<8x1xf32>
    %17 = vector.broadcast %16 : vector<8x1xf32> to vector<8x128xf32>
    %18 = arith.divf %14, %17 : vector<8x128xf32>
    %c0_12 = arith.constant 0 : index
    %c0_13 = arith.constant 0 : index
    %19 = vector.load %arg6[%c0_12, %c0_13] : memref<8x128xf32, #tpu.memory_space<vmem>>, vector<8x128xf32>
    tpu.vector_store %arg6[%c0_12, %c0_13], %18 {strides = array<i32>} : memref<8x128xf32, #tpu.memory_space<vmem>>, vector<8x128xf32>,
    return
  }
  func.func @transform_0(%arg0: i32) -> (i32, i32) {
    %c0_i32 = arith.constant 0 : i32
    %c0_i32_0 = arith.constant 0 : i32
    return %arg0, %c0_i32 : i32, i32
  }
  func.func @transform_1(%arg0: i32) -> (i32, i32) {
    %c0_i32 = arith.constant 0 : i32
    %c0_i32_0 = arith.constant 0 : i32
    return %arg0, %c0_i32 : i32, i32
  }
  func.func @transform_2(%arg0: i32) -> (i32, i32) {
    %c0_i32 = arith.constant 0 : i32
    %c0_i32_0 = arith.constant 0 : i32
    %c0_i32_1 = arith.constant 0 : i32
    return %c0_i32, %c0_i32_0 : i32, i32
  }
  func.func @transform_3(%arg0: i32) -> (i32, i32) {
    %c0_i32 = arith.constant 0 : i32
    %c0_i32_0 = arith.constant 0 : i32
    %c0_i32_1 = arith.constant 0 : i32
    return %c0_i32, %c0_i32_0 : i32, i32
  }
  func.func @transform_4(%arg0: i32) -> (i32, i32) {
    %c0_i32 = arith.constant 0 : i32
    %c0_i32_0 = arith.constant 0 : i32
    %c0_i32_1 = arith.constant 0 : i32
    return %c0_i32, %c0_i32_0 : i32, i32
  }
  func.func @transform_5(%arg0: i32) -> (i32, i32) {
    %c0_i32 = arith.constant 0 : i32
    %c0_i32_0 = arith.constant 0 : i32
    return %arg0, %c0_i32 : i32, i32
  }
}

</mosaic_0001>

<bundles_post_ra>
// kernel: predict_with_base.1
= control target key start
LH: loop header
LB: loop body
LE: loop exit
PB: predicated region body
PF: predicated region fallthrough
CT: control target
= control target key end

     0   :  { %10 = vsyncpa [#allocation3], 0  ;;  %s546_s0 = inlined_call_operand.hbm [shape: f32[8,32], index: 0, kind: input, shape index: {}]   ;;  %s547_s1 = inlined_call_operand.hbm [shape: f32[8,32], index: 1, kind: input, shape index: {}]   ;;  %s548_s2 = inlined_call_operand.hbm [shape: f32[32,128], index: 2, kind: input, shape index: {}]   ;;  %s549_s3 = inlined_call_operand.hbm [shape: f32[32,128], index: 3, kind: input, shape index: {}]   ;;  %s550_s4 = inlined_call_operand.vmem [shape: f32[1,128], index: 4, kind: input, shape index: {}]   ;;  %s551_s5 = inlined_call_operand.hbm [shape: f32[8,128], index: 5, kind: output, shape index: {}]  }
   0x1   :  { %11 = vsyncpa [#allocation6], 0 }
   0x2   :  { %12 = vsyncpa [#allocation9], 0 }
   0x3   :  { %13 = vsyncpa [#allocation4], 0  ;;  %s443_s18 = smov [#allocation5]   ;;  %s444_s20 = smov [#allocation2]  }
   0x4   :  { %s30_s19 = sshll.u32 %s443_s18, 4  ;;  %s20_s21 = sshll.u32 %s444_s20, 4  ;;  %s31_s19 = int_to_ptr.vmem [resolvable:$true] %s30_s19  ;;  %s21_s21 = int_to_ptr.vmem [resolvable:$true] %s20_s21 }
   0x5   :  { %s325_s24 = scalar_lea.hbm %s547_s1, 128 }
   0x6   :  { %p326_p0 = scmp.ne.s32.totalorder %s547_s1, %s325_s24  ;;  %p329_p1 = scmp.lt.u32.totalorder %s325_s24, %s547_s1 }
   0x8   :  { %p331_p2 = pnand %p329_p1, %p326_p0 }
   0xa   :  { %334 = shalt.err (!%p331_p2)
}
   0xb   :  { %s335_s29 = scalar_lea.vmem %s31_s19, 128  ;;  %p340_p4 = scmp.lt.s32.totalorder %s31_s19, %s31_s19 }
   0xc   :  { %p336_p3 = scmp.ne.s32.totalorder %s31_s19, %s335_s29  ;;  %p341_p5 = scmp.lt.s32.totalorder %s335_s29, %s335_s29 }
   0xe   :  { %p342_p6 = por %p341_p5, %p340_p4 }
  0x10   :  { %p343_p7 = pnand %p342_p6, %p336_p3 }
  0x12   :  { %346 = shalt.err (!%p343_p7)
}
  0x13   :  { %33 = dma.hbm_to_vmem [thread:$0]  %s547_s1, 128, %s31_s19, [#allocation6]  }
  0x14   :  { %s347_s9 = scalar_lea.hbm %s546_s0, 128 }
  0x15   :  { %p348_p8 = scmp.ne.s32.totalorder %s546_s0, %s347_s9  ;;  %p351_p9 = scmp.lt.u32.totalorder %s347_s9, %s546_s0 }
  0x17   :  { %p353_p10 = pnand %p351_p9, %p348_p8 }
  0x19   :  { %356 = shalt.err (!%p353_p10)
}
  0x1a   :  { %s357_s14 = scalar_lea.vmem %s21_s21, 128  ;;  %p362_p12 = scmp.lt.s32.totalorder %s21_s21, %s21_s21 }
  0x1b   :  { %p358_p11 = scmp.ne.s32.totalorder %s21_s21, %s357_s14  ;;  %p363_p13 = scmp.lt.s32.totalorder %s357_s14, %s357_s14 }
  0x1d   :  { %p364_p0 = por %p363_p13, %p362_p12 }
  0x1f   :  { %p365_p1 = pnand %p364_p0, %p358_p11 }
  0x21   :  { %368 = shalt.err (!%p365_p1)
}
  0x22   :  { %23 = dma.hbm_to_vmem [thread:$0]  %s546_s0, 128, %s21_s21, [#allocation3]  }
  0x23   :  { %s445_s16 = smov [#allocation7]   ;;  %s369_s20 = scalar_lea.hbm %s548_s2, 512 }
  0x24   :  { %s39_s17 = sshll.u32 %s445_s16, 4  ;;  %p370_p2 = scmp.ne.s32.totalorder %s548_s2, %s369_s20  ;;  %s40_s17 = int_to_ptr.vmem [resolvable:$true] %s39_s17 }
  0x25   :  { %p373_p3 = scmp.lt.u32.totalorder %s369_s20, %s548_s2 }
  0x27   :  { %p375_p4 = pnand %p373_p3, %p370_p2 }
  0x29   :  { %378 = shalt.err (!%p375_p4)
}
  0x2a   :  { %s379_s26 = scalar_lea.vmem %s40_s17, 512  ;;  %p384_p6 = scmp.lt.s32.totalorder %s40_s17, %s40_s17 }
  0x2b   :  { %p380_p5 = scmp.ne.s32.totalorder %s40_s17, %s379_s26  ;;  %p385_p7 = scmp.lt.s32.totalorder %s379_s26, %s379_s26 }
  0x2d   :  { %p386_p8 = por %p385_p7, %p384_p6 }
  0x2f   :  { %p387_p9 = pnand %p386_p8, %p380_p5 }
  0x31   :  { %390 = shalt.err (!%p387_p9)
}
  0x32   :  { %s446_s0 = smov 128   ;;  %s447_s21 = smov 8  }
  0x33   :  { %45 = dma.hbm_to_vmem [thread:$0]  %s548_s2, 512, %s40_s17, [#allocation6], %s446_s0, %s446_s0, %s447_s21  }
  0x34   :  { %s448_s29 = smov [#allocation8]   ;;  %s391_s8 = scalar_lea.hbm %s549_s3, 512 }
  0x35   :  { %s51_s30 = sshll.u32 %s448_s29, 4  ;;  %p392_p10 = scmp.ne.s32.totalorder %s549_s3, %s391_s8  ;;  %s52_s30 = int_to_ptr.vmem [resolvable:$true] %s51_s30 }
  0x36   :  { %p395_p11 = scmp.lt.u32.totalorder %s391_s8, %s549_s3 }
  0x38   :  { %p397_p12 = pnand %p395_p11, %p392_p10 }
  0x3a   :  { %400 = shalt.err (!%p397_p12)
}
  0x3b   :  { %s401_s13 = scalar_lea.vmem %s52_s30, 512  ;;  %p406_p0 = scmp.lt.s32.totalorder %s52_s30, %s52_s30 }
  0x3c   :  { %p402_p13 = scmp.ne.s32.totalorder %s52_s30, %s401_s13  ;;  %p407_p1 = scmp.lt.s32.totalorder %s401_s13, %s401_s13 }
  0x3e   :  { %p408_p2 = por %p407_p1, %p406_p0 }
  0x40   :  { %p409_p3 = pnand %p408_p2, %p402_p13 }
  0x42   :  { %412 = shalt.err (!%p409_p3)
}
  0x43   :  { %57 = dma.hbm_to_vmem [thread:$0]  %s549_s3, 512, %s52_s30, [#allocation9], %s446_s0, %s446_s0, %s447_s21  }
  0x44   :  { %435 = dma.done.wait [#allocation3], 128  }
  0x45   :  { %436 = vsyncadd [#allocation3], 4294967168 }
  0x46   :  { %437 = dma.done.wait [#allocation6], 640  }
  0x47   :  { %438 = vsyncadd [#allocation6], 4294966656 }
  0x48   :  { %439 = dma.done.wait [#allocation9], 512  }
  0x49   :  { %440 = vsyncadd [#allocation9], 4294966784  ;;  %v449_v0 = vmov 0.0|0.0   ;;  %vm450_vm0 = vmmov 0   ;;  %v451_v1 = vmov 0.0   ;;  %v78_v2 = vld [vmem:[#allocation8] sm:$0xff] }
  0x4a   :  { %299 = vmatprep.subr.bf16.mxu0 %v449_v0  ;;  %305 = vmatprep.subr.bf16.mxu1 %v449_v0  ;;  %v79_v3 = vld [vmem:[#allocation8 + $0x8] sm:$0xff]  ;;  %v73_v4 = vld [vmem:[#allocation7] sm:$0xff]  ;;  %v80_v7 = vld [vmem:[#allocation8 + $0x10] sm:$0xff]  ;;  %vm82_vm1 = vcmask 261120   ;;  %s452_s15 = smov [#allocation10]  }
  0x4b   :  { %285 = vmatprep.mubr.msk.f32.mxu0 %vm450_vm0, %v451_v1  ;;  %296 = vmatprep.mubr.msk.f32.mxu1 %vm450_vm0, %v451_v1  ;;  %v300_v5 = vpack.c.bf16 %v79_v3, %v78_v2  ;;  %v74_v6 = vld [vmem:[#allocation7 + $0x8] sm:$0xff]  ;;  %v81_v8 = vld [vmem:[#allocation8 + $0x18] sm:$0xff]  ;;  %v75_v10 = vld [vmem:[#allocation7 + $0x10] sm:$0xff]  ;;  %s253_s16 = sshll.u32 %s452_s15, 4  ;;  %s254_s16 = int_to_ptr.vmem [resolvable:$true] %s253_s16 }
  0x4c   :  { %v306_v9 = vpack.c.bf16 %v74_v6, %v73_v4  ;;  %v76_v11 = vld [vmem:[#allocation7 + $0x18] sm:$0xff]  ;;  %v303_v12 = vpack.c.bf16 %v81_v8, %v80_v7  ;;  %v72_v15 = vld [vmem:[#allocation2] sm:$0xff]  ;;  %s413_s17 = scalar_lea.vmem %s254_s16, 128  ;;  %p418_p5 = scmp.lt.s32.totalorder %s254_s16, %s254_s16 }
  0x4d   :  { %301 = vmatpush3.bf16.msra.mxu0 %v300_v5  ;;  %v309_v13 = vpack.c.bf16 %v76_v11, %v75_v10  ;;  %v77_v14 = vld [vmem:[#allocation5] sm:$0xff]  ;;  %v266_v19 = vld [vmem:[%s550_s4] ss:$0 sm:$0xff]  ;;  %p414_p4 = scmp.ne.s32.totalorder %s254_s16, %s413_s17  ;;  %p419_p6 = scmp.lt.s32.totalorder %s413_s17, %s413_s17 }
  0x4e   :  { %307 = vmatpush3.bf16.msra.mxu1 %v306_v9  ;;  %302 = vmatprep.subr.bf16.mxu0 %v449_v0 }
  0x4f   :  { %308 = vmatprep.subr.bf16.mxu1 %v449_v0  ;;  %p420_p7 = por %p419_p6, %p418_p5 }
  0x51   :  { %304 = vmatpush3.bf16.msra.mxu0 %v303_v12  ;;  %p421_p8 = pnand %p420_p7, %p414_p4 }
  0x52   :  { %310 = vmatpush3.bf16.msra.mxu1 %v309_v13 }
  0x54   :  { %286 = vmatmul.mubr.msk.f32.vlgmr.msra.gmra.mrb[0].mxu0 %vm82_vm1, %v77_v14 }
  0x55   :  { %297 = vmatmul.mubr.msk.f32.vlgmr.msra.gmra.mrb[0].mxu1 %vm82_vm1, %v72_v15 }
 0x127   :  { %v152_v16 = vpop.f32.mrb[0].mxu0 }
 0x128   :  { %v225_v17 = vpop.f32.mrb[0].mxu1  ;;  %v287_v18 = vpop.f32.mrb[1].mxu0 }
 0x129   :  { %v226_v20 = vadd.f32 %v225_v17, %v152_v16  ;;  %v298_v21 = vpop.f32.mrb[1].mxu1 }
 0x12b   :  { %v236_v22 = vadd.f32 %v266_v19, %v226_v20 }
 0x12d   :  { %237 = vmax.xlane.f32.xlu0 %v236_v22 }
 0x1ba   :  { %v238_v23 = vpop.xlane.xlu0 %237 }
 0x1bb   :  { %v239_v24 = vsub.f32 %v236_v22, %v238_v23 }
 0x1bd   :  { %v240_v25 = vmul.f32 1.442695, %v239_v24 }
 0x1bf   :  { %321 = vpow2.f32 %v240_v25 }
 0x1c9   :  { %v322_v26 = vpop.eup %321 }
 0x1ca   :  { %242 = vadd.xlane.f32.xlu0 %v322_v26 }
 0x257   :  { %v243_v27 = vpop.xlane.xlu0 %242 }
 0x258   :  { %323 = vrcp.f32 %v243_v27 }
 0x262   :  { %v324_v28 = vpop.eup %323 }
 0x263   :  { %v245_v29 = vmul.f32 %v324_v28, %v322_v26 }
 0x265   :  { %246 = vst [vmem:[#allocation10] sm:$0xff] %v245_v29 }
 0x266   :  { %424 = shalt.err (!%p421_p8)
}
 0x267   :  { %s425_s19 = scalar_lea.hbm %s551_s5, 128 }
 0x268   :  { %p426_p9 = scmp.ne.s32.totalorder %s551_s5, %s425_s19  ;;  %p429_p10 = scmp.lt.u32.totalorder %s425_s19, %s551_s5 }
 0x26a   :  { %p431_p11 = pnand %p429_p10, %p426_p9 }
 0x26c   :  { %434 = shalt.err (!%p431_p11)
}
 0x26d   :  { %256 = dma.vmem_to_hbm [thread:$0]  %s254_s16, 128, %s551_s5, [#allocation4]  }
 0x26e   :  { %441 = dma.done.wait [#allocation4], 128  }
 0x26f   :  { %442 = vsyncadd [#allocation4], 4294967168 }
 0x270   :  { %260 = vsyncpa [#allocation3], 1 }
 0x271   :  { %261 = vsyncpa [#allocation6], 1 }
 0x272   :  { %262 = vsyncpa [#allocation9], 1 }
 0x273   :  { %263 = vsyncpa [#allocation4], 1 }

</bundles_post_ra>
